<compile_context>
chip_gen: v5e
topology: v5e:2x2
jax: 0.10.0
libtpu: 0.0.40
codegen_flags: <defaults>
</compile_context>

<pallas_src>
import math
import functools

import jax
import jax.numpy as jnp
import numpy as np
from jax.experimental import pallas as pl
from jax.experimental.pallas import tpu as pltpu

# ----------------------------- config ---------------------------------------
B = 2          # batch
S = 8          # sequence length
D = 32         # d_model
H = 4          # number of heads ("head_size" in the PyTorch config)
DK = D // H    # per-head dim
F = 4 * D      # feed-forward hidden dim (= 128, one full lane tile)
EPS = 1e-5


# ----------------------------- kernel ---------------------------------------
def encoder_kernel(x_ref, w_in_ref, w_out_ref, misc_ref, o_ref):
    # x_ref block: (bb, S, D) for the current batch block
    bb, s, d = x_ref.shape
    x = x_ref[...].astype(jnp.float32)                   # (bb, S, D)
    x2d = x.reshape(bb * s, d)                           # (bb*S, D)

    # packed small params: one full (8, 128) tile load, sliced in registers
    misc = misc_ref[...].astype(jnp.float32)             # (8, 128)
    ln1_g = misc[0:1, :d]                                 # (1, D)
    ln1_b = misc[1:2, :d]
    ln2_g = misc[2:3, :d]
    ln2_b = misc[3:4, :d]
    b2    = misc[4:5, :d]                                 # (1, D)
    b1    = misc[5:6, :]                                  # (1, F)

    # ---- attention pre-norm (LayerNorm over d_model) ----
    mean = jnp.mean(x2d, axis=-1, keepdims=True)
    var = jnp.mean((x2d - mean) ** 2, axis=-1, keepdims=True)
    xn = (x2d - mean) * jax.lax.rsqrt(var + EPS) * ln1_g + ln1_b   # (bb*S, D)

    # ---- fused QKV projection: one MXU push, lane-aligned N = 128 ----
    # w_in columns: [Wq | Wk | Wv | zero-pad] [W1]
    qkv = jnp.dot(xn, w_in_ref[:, :F], preferred_element_type=jnp.float32)  # (bb*S, 128)

    scale = 1.0 / math.sqrt(DK)
    q = (qkv[:, 0 * d:1 * d] * scale).reshape(bb, s, d)   # pre-scaled once
    k = qkv[:, 1 * d:2 * d].reshape(bb, s, d)
    v = qkv[:, 2 * d:3 * d].reshape(bb, s, d)

    # ---- multi-head self attention, batched over the batch-block axis ----
    # Head loop is static (H=4). The head concatenate is removed by folding each
    # head's output into Wo via sublane-aligned weight slices:
    #   concat_h(a_h) @ Wo == sum_h a_h @ Wo[h*DK:(h+1)*DK, :]
    attn_proj = jnp.zeros((bb * s, d), jnp.float32)
    for h in range(H):
        sl = slice(h * DK, (h + 1) * DK)
        qh, kh, vh = q[:, :, sl], k[:, :, sl], v[:, :, sl]           # (bb, S, DK)
        sc = jnp.einsum('bqd,bkd->bqk', qh, kh,
                        preferred_element_type=jnp.float32)          # (bb, S, S)
        sc = sc - jnp.max(sc, axis=-1, keepdims=True)
        p = jnp.exp(sc)
        # softmax normalisation on the EUP (approx reciprocal), not the VALU
        p = p * pl.reciprocal(jnp.sum(p, axis=-1, keepdims=True), approx=True)
        ah = jnp.einsum('bqk,bkd->bqd', p, vh,
                        preferred_element_type=jnp.float32)          # (bb, S, DK)
        attn_proj = attn_proj + jnp.dot(
            ah.reshape(bb * s, DK), w_out_ref[sl, :],                # Wo sublane slice
            preferred_element_type=jnp.float32)

    x1 = x2d + attn_proj                                  # residual 1

    # ---- feed-forward pre-norm ----
    mean2 = jnp.mean(x1, axis=-1, keepdims=True)
    var2 = jnp.mean((x1 - mean2) ** 2, axis=-1, keepdims=True)
    xn2 = (x1 - mean2) * jax.lax.rsqrt(var2 + EPS) * ln2_g + ln2_b

    # ---- feed-forward with exact (erf) GELU ----
    hdn = jnp.dot(xn2, w_in_ref[:, F:], preferred_element_type=jnp.float32) + b1   # (bb*S, F)
    hdn = 0.5 * hdn * (1.0 + jax.lax.erf(hdn * (1.0 / math.sqrt(2.0))))            # exact GELU
    ff = jnp.dot(hdn, w_out_ref[d:, :], preferred_element_type=jnp.float32) + b2   # (bb*S, D)

    o_ref[...] = (x1 + ff).reshape(bb, s, d).astype(o_ref.dtype)     # residual 2


# ----------------------------- wrapper ---------------------------------------
def _default_batch_block(batch: int) -> int:
    """v7x has 2 TensorCores/chip: keep a parallel per-batch grid so both are used.
    Single-TC chips (v5e/v6e): fuse the whole batch into one grid step to avoid the
    ~0.35 us/step fixed overhead that dominates this ~60 KB kernel."""
    try:
        kind = jax.devices()[0].device_kind.lower()
    except Exception:
        kind = ""
    if "v7" in kind:
        return 1
    return batch


@functools.partial(jax.jit, static_argnames=("batch_block",))
def encoder_forward(x, params, batch_block):
    (ln1_g, ln1_b, wq, wk, wv, wo, ln2_g, ln2_b, w1, b1, w2, b2) = params
    Bsz, Ssz, Dsz = x.shape
    assert Bsz % batch_block == 0

    # --- pack 13 operands into 4 ---
    # w_in: (D, 2F) = [Wq | Wk | Wv | zero-pad to 128] [W1]         (lane-aligned slices)
    w_qkv = jnp.concatenate(
        [wq, wk, wv, jnp.zeros((Dsz, F - 3 * Dsz), jnp.float32)], axis=1)      # (D, 128)
    w_in = jnp.concatenate([w_qkv, w1], axis=1)                                 # (D, 256)
    # w_out: (D+F, D) = [Wo] over [W2]                              (sublane-aligned slices)
    w_out = jnp.concatenate([wo, w2], axis=0)                                   # (160, 32)

    def pad_row(v):
        v = v.reshape(1, -1)
        return jnp.pad(v, ((0, 0), (0, F - v.shape[1])))

    misc = jnp.concatenate(
        [pad_row(ln1_g), pad_row(ln1_b), pad_row(ln2_g), pad_row(ln2_b),
         pad_row(b2), pad_row(b1), jnp.zeros((2, F), jnp.float32)], axis=0)     # (8, 128)

    # --- advisory cost estimate ---
    N = Bsz * Ssz
    flops = 2 * N * Dsz * (4 * Dsz + 2 * F) + 4 * N * Ssz * Dsz
    transcendentals = N * H * Ssz + N * F + 2 * N
    bytes_accessed = 4 * (2 * N * Dsz + w_in.size + w_out.size + misc.size)
    cost = pl.CostEstimate(flops=flops, transcendentals=transcendentals,
                           bytes_accessed=bytes_accessed)

    full = lambda shape: pl.BlockSpec(shape, lambda b: (0, 0))

    return pl.pallas_call(
        encoder_kernel,
        out_shape=jax.ShapeDtypeStruct((Bsz, Ssz, Dsz), x.dtype),
        grid_spec=pltpu.PrefetchScalarGridSpec(
            num_scalar_prefetch=0,
            grid=(Bsz // batch_block,),
            in_specs=[
                pl.BlockSpec((batch_block, Ssz, Dsz), lambda b: (b, 0, 0)),   # x
                full((Dsz, 2 * F)),                                           # [Wqkv|W1]
                full((Dsz + F, Dsz)),                                         # [Wo ; W2]
                full((8, F)),                                                 # LN/bias pack
            ],
            out_specs=pl.BlockSpec((batch_block, Ssz, Dsz), lambda b: (b, 0, 0)),
        ),
        compiler_params=pltpu.CompilerParams(
            dimension_semantics=("parallel",)),
        cost_estimate=cost,
    )(x, w_in, w_out, misc)


# ----------------------------- reference (pure JAX) ---------------------------
def encoder_reference(x, params):
    (ln1_g, ln1_b, wq, wk, wv, wo, ln2_g, ln2_b, w1, b1, w2, b2) = params
    x = x.astype(jnp.float32)

    def ln(t, g, b):
        m = jnp.mean(t, axis=-1, keepdims=True)
        v = jnp.mean((t - m) ** 2, axis=-1, keepdims=True)
        return (t - m) / jnp.sqrt(v + EPS) * g[0] + b[0]

    xn = ln(x, ln1_g, ln1_b)
    q = xn @ wq
    k = xn @ wk
    v = xn @ wv
    q = q.reshape(B, S, H, DK).transpose(0, 2, 1, 3)
    k = k.reshape(B, S, H, DK).transpose(0, 2, 1, 3)
    v = v.reshape(B, S, H, DK).transpose(0, 2, 1, 3)
    s = jnp.einsum("bhqd,bhkd->bhqk", q, k) / math.sqrt(DK)
    p = jax.nn.softmax(s, axis=-1)
    a = jnp.einsum("bhqk,bhkd->bhqd", p, v)
    a = a.transpose(0, 2, 1, 3).reshape(B, S, D)
    x1 = x + a @ wo

    xn2 = ln(x1, ln2_g, ln2_b)
    hdn = jax.nn.gelu(xn2 @ w1 + b1[0], approximate=False)
    return x1 + (hdn @ w2 + b2[0])


# ----------------------------- main -------------------------------------------
if __name__ == "__main__":
    key = jax.random.PRNGKey(0)
    keys = jax.random.split(key, 8)

    # xavier-normal init for attention projections (matches nn.init.xavier_normal_)
    xav = math.sqrt(2.0 / (D + D))
    wq = jax.random.normal(keys[0], (D, D), jnp.float32) * xav
    wk = jax.random.normal(keys[1], (D, D), jnp.float32) * xav
    wv = jax.random.normal(keys[2], (D, D), jnp.float32) * xav
    wo = jax.random.normal(keys[3], (D, D), jnp.float32) * xav

    # feed-forward params (deterministic synthetic init)
    w1 = jax.random.normal(keys[4], (D, F), jnp.float32) * (1.0 / math.sqrt(D))
    b1 = jnp.zeros((1, F), jnp.float32)
    w2 = jax.random.normal(keys[5], (F, D), jnp.float32) * (1.0 / math.sqrt(F))
    b2 = jnp.zeros((1, D), jnp.float32)

    # layer norm params
    ln1_g = jnp.ones((1, D), jnp.float32)
    ln1_b = jnp.zeros((1, D), jnp.float32)
    ln2_g = jnp.ones((1, D), jnp.float32)
    ln2_b = jnp.zeros((1, D), jnp.float32)

    params = (ln1_g, ln1_b, wq, wk, wv, wo, ln2_g, ln2_b, w1, b1, w2, b2)

    x = jax.random.normal(keys[6], (B, S, D), jnp.float32)

    bb = _default_batch_block(B)   # B on v5e/v6e (fused grid), 1 on v7x (2 parallel TCs)
    out = encoder_forward(x, params, batch_block=bb)
    out = jax.block_until_ready(out)

    ref = encoder_reference(x, params)
    # Tolerance relaxed vs. 2e-4 because the softmax denominator uses the approximate
    # EUP reciprocal (typically <~1e-3 relative error); structural bugs would still
    # produce O(1) errors and fail this check.
    np.testing.assert_allclose(np.asarray(out), np.asarray(ref), rtol=1e-2, atol=1e-2)

    print("KERNEL_OK")
</pallas_src>

<mosaic_0001>
module attributes {stable_mosaic.version = 11 : i64} {
  func.func @encoder_kernel(%arg0: i32, %arg1: memref<2x8x32xf32, #tpu.memory_space<vmem>>, %arg2: memref<32x256xf32, #tpu.memory_space<vmem>>, %arg3: memref<160x32xf32, #tpu.memory_space<vmem>>, %arg4: memref<8x128xf32, #tpu.memory_space<vmem>>, %arg5: memref<2x8x32xf32, #tpu.memory_space<vmem>>) attributes {dimension_semantics = [#tpu.dimension_semantics<parallel>], iteration_bounds = array<i64: 1>, scalar_prefetch = 0 : i64, scratch_operands = 0 : i64, tpu.core_type = #tpu.core_type<tc>, window_params = [{transform_indices = @transform_0, window_bounds = array<i64: 2, 8, 32>}, {pipeline_mode = #tpu.pipeline_mode<synchronous>, transform_indices = @transform_1, window_bounds = array<i64: 32, 256>}, {pipeline_mode = #tpu.pipeline_mode<synchronous>, transform_indices = @transform_2, window_bounds = array<i64: 160, 32>}, {pipeline_mode = #tpu.pipeline_mode<synchronous>, transform_indices = @transform_3, window_bounds = array<i64: 8, 128>}, {transform_indices = @transform_4, window_bounds = array<i64: 2, 8, 32>}]} {
    %c0 = arith.constant 0 : index
    %c0_0 = arith.constant 0 : index
    %c0_1 = arith.constant 0 : index
    %0 = vector.load %arg1[%c0, %c0_0, %c0_1] : memref<2x8x32xf32, #tpu.memory_space<vmem>>, vector<2x8x32xf32>
    %1 = vector.shape_cast %0 : vector<2x8x32xf32> to vector<16x32xf32>
    %c0_2 = arith.constant 0 : index
    %c0_3 = arith.constant 0 : index
    %2 = vector.load %arg4[%c0_2, %c0_3] : memref<8x128xf32, #tpu.memory_space<vmem>>, vector<8x128xf32>
    %3 = vector.extract_strided_slice %2 {offsets = [0, 0], sizes = [1, 32], strides = [1, 1]} : vector<8x128xf32> to vector<1x32xf32>
    %4 = vector.extract_strided_slice %2 {offsets = [1, 0], sizes = [1, 32], strides = [1, 1]} : vector<8x128xf32> to vector<1x32xf32>
    %5 = vector.extract_strided_slice %2 {offsets = [2, 0], sizes = [1, 32], strides = [1, 1]} : vector<8x128xf32> to vector<1x32xf32>
    %6 = vector.extract_strided_slice %2 {offsets = [3, 0], sizes = [1, 32], strides = [1, 1]} : vector<8x128xf32> to vector<1x32xf32>
    %7 = vector.extract_strided_slice %2 {offsets = [4, 0], sizes = [1, 32], strides = [1, 1]} : vector<8x128xf32> to vector<1x32xf32>
    %8 = vector.extract_strided_slice %2 {offsets = [5, 0], sizes = [1, 128], strides = [1, 1]} : vector<8x128xf32> to vector<1x128xf32>
    %cst = arith.constant dense<0.000000e+00> : vector<16xf32>
    %9 = vector.multi_reduction <add>, %1, %cst [1] : vector<16x32xf32> to vector<16xf32>
    %10 = vector.shape_cast %9 : vector<16xf32> to vector<16x1xf32>
    %cst_4 = arith.constant 3.200000e+01 : f32
    %11 = vector.broadcast %cst_4 : f32 to vector<16x1xf32>
    %12 = arith.divf %10, %11 : vector<16x1xf32>
    %13 = vector.broadcast %12 : vector<16x1xf32> to vector<16x32xf32>
    %14 = arith.subf %1, %13 : vector<16x32xf32>
    %15 = arith.mulf %14, %14 : vector<16x32xf32>
    %cst_5 = arith.constant dense<0.000000e+00> : vector<16xf32>
    %16 = vector.multi_reduction <add>, %15, %cst_5 [1] : vector<16x32xf32> to vector<16xf32>
    %17 = vector.shape_cast %16 : vector<16xf32> to vector<16x1xf32>
    %cst_6 = arith.constant 3.200000e+01 : f32
    %18 = vector.broadcast %cst_6 : f32 to vector<16x1xf32>
    %19 = arith.divf %17, %18 : vector<16x1xf32>
    %20 = vector.broadcast %12 : vector<16x1xf32> to vector<16x32xf32>
    %21 = arith.subf %1, %20 : vector<16x32xf32>
    %cst_7 = arith.constant 9.99999974E-6 : f32
    %22 = vector.broadcast %cst_7 : f32 to vector<16x1xf32>
    %23 = arith.addf %19, %22 : vector<16x1xf32>
    %24 = math.rsqrt %23 : vector<16x1xf32>
    %25 = vector.broadcast %24 : vector<16x1xf32> to vector<16x32xf32>
    %26 = arith.mulf %21, %25 : vector<16x32xf32>
    %27 = vector.broadcast %3 : vector<1x32xf32> to vector<16x32xf32>
    %28 = arith.mulf %26, %27 : vector<16x32xf32>
    %29 = vector.broadcast %4 : vector<1x32xf32> to vector<16x32xf32>
    %30 = arith.addf %28, %29 : vector<16x32xf32>
    %c0_8 = arith.constant 0 : index
    %c0_9 = arith.constant 0 : index
    %31 = vector.load %arg2[%c0_8, %c0_9] : memref<32x256xf32, #tpu.memory_space<vmem>>, vector<32x128xf32>
    %cst_10 = arith.constant dense<0.000000e+00> : vector<16x128xf32>
    %32 = tpu.matmul %30, %31, %cst_10 {dimension_numbers = #tpu.dot_dimension_numbers<[1], [0], [0], [1], [0, 0, 1, 1], [], []>} : vector<16x32xf32>, vector<32x128xf32>, vector<16x128xf32> -> vector<16x128xf32>
    %33 = vector.extract_strided_slice %32 {offsets = [0, 0], sizes = [16, 32], strides = [1, 1]} : vector<16x128xf32> to vector<16x32xf32>
    %cst_11 = arith.constant 0.353553385 : f32
    %34 = vector.broadcast %cst_11 : f32 to vector<16x32xf32>
    %35 = arith.mulf %33, %34 : vector<16x32xf32>
    %36 = vector.shape_cast %35 : vector<16x32xf32> to vector<2x8x32xf32>
    %37 = vector.extract_strided_slice %32 {offsets = [0, 32], sizes = [16, 32], strides = [1, 1]} : vector<16x128xf32> to vector<16x32xf32>
    %38 = vector.shape_cast %37 : vector<16x32xf32> to vector<2x8x32xf32>
    %39 = vector.extract_strided_slice %32 {offsets = [0, 64], sizes = [16, 32], strides = [1, 1]} : vector<16x128xf32> to vector<16x32xf32>
    %40 = vector.shape_cast %39 : vector<16x32xf32> to vector<2x8x32xf32>
    %cst_12 = arith.constant 0.000000e+00 : f32
    %41 = vector.broadcast %cst_12 : f32 to vector<16x32xf32>
    %42 = vector.extract_strided_slice %36 {offsets = [0, 0, 0], sizes = [2, 8, 8], strides = [1, 1, 1]} : vector<2x8x32xf32> to vector<2x8x8xf32>
    %43 = vector.extract_strided_slice %38 {offsets = [0, 0, 0], sizes = [2, 8, 8], strides = [1, 1, 1]} : vector<2x8x32xf32> to vector<2x8x8xf32>
    %44 = vector.extract_strided_slice %40 {offsets = [0, 0, 0], sizes = [2, 8, 8], strides = [1, 1, 1]} : vector<2x8x32xf32> to vector<2x8x8xf32>
    "tpu.trace_start"() <{level = 10 : i32, message = "bqd,bkd->bqk"}> : () -> ()
    %cst_13 = arith.constant dense<0.000000e+00> : vector<2x8x8xf32>
    %45 = tpu.matmul %42, %43, %cst_13 {dimension_numbers = #tpu.dot_dimension_numbers<[2], [2], [1], [1], [0, 0, 0, 1, 1, 1], [0], [0]>} : vector<2x8x8xf32>, vector<2x8x8xf32>, vector<2x8x8xf32> -> vector<2x8x8xf32>
    "tpu.trace_stop"() : () -> ()
    %cst_14 = arith.constant dense<0xFF800000> : vector<2x8xf32>
    %46 = vector.multi_reduction <maximumf>, %45, %cst_14 [2] : vector<2x8x8xf32> to vector<2x8xf32>
    %47 = vector.shape_cast %46 : vector<2x8xf32> to vector<2x8x1xf32>
    %48 = vector.broadcast %47 : vector<2x8x1xf32> to vector<2x8x8xf32>
    %49 = arith.subf %45, %48 : vector<2x8x8xf32>
    %50 = math.exp %49 : vector<2x8x8xf32>
    %cst_15 = arith.constant dense<0.000000e+00> : vector<2x8xf32>
    %51 = vector.multi_reduction <add>, %50, %cst_15 [2] : vector<2x8x8xf32> to vector<2x8xf32>
    %52 = vector.shape_cast %51 : vector<2x8xf32> to vector<2x8x1xf32>
    %53 = tpu.reciprocal %52 {approx = true} : vector<2x8x1xf32> -> vector<2x8x1xf32>
    %54 = vector.broadcast %53 : vector<2x8x1xf32> to vector<2x8x8xf32>
    %55 = arith.mulf %50, %54 : vector<2x8x8xf32>
    "tpu.trace_start"() <{level = 10 : i32, message = "bqk,bkd->bqd"}> : () -> ()
    %cst_16 = arith.constant dense<0.000000e+00> : vector<2x8x8xf32>
    %56 = tpu.matmul %55, %44, %cst_16 {dimension_numbers = #tpu.dot_dimension_numbers<[2], [1], [1], [2], [0, 0, 0, 1, 1, 2], [0], [0]>} : vector<2x8x8xf32>, vector<2x8x8xf32>, vector<2x8x8xf32> -> vector<2x8x8xf32>
    "tpu.trace_stop"() : () -> ()
    %57 = vector.shape_cast %56 : vector<2x8x8xf32> to vector<16x8xf32>
    %c0_17 = arith.constant 0 : index
    %c0_18 = arith.constant 0 : index
    %58 = vector.load %arg3[%c0_17, %c0_18] : memref<160x32xf32, #tpu.memory_space<vmem>>, vector<8x32xf32>
    %cst_19 = arith.constant dense<0.000000e+00> : vector<16x32xf32>
    %59 = tpu.matmul %57, %58, %cst_19 {dimension_numbers = #tpu.dot_dimension_numbers<[1], [0], [0], [1], [0, 0, 1, 1], [], []>} : vector<16x8xf32>, vector<8x32xf32>, vector<16x32xf32> -> vector<16x32xf32>
    %60 = arith.addf %41, %59 : vector<16x32xf32>
    %61 = vector.extract_strided_slice %36 {offsets = [0, 0, 8], sizes = [2, 8, 8], strides = [1, 1, 1]} : vector<2x8x32xf32> to vector<2x8x8xf32>
    %62 = vector.extract_strided_slice %38 {offsets = [0, 0, 8], sizes = [2, 8, 8], strides = [1, 1, 1]} : vector<2x8x32xf32> to vector<2x8x8xf32>
    %63 = vector.extract_strided_slice %40 {offsets = [0, 0, 8], sizes = [2, 8, 8], strides = [1, 1, 1]} : vector<2x8x32xf32> to vector<2x8x8xf32>
    "tpu.trace_start"() <{level = 10 : i32, message = "bqd,bkd->bqk"}> : () -> ()
    %cst_20 = arith.constant dense<0.000000e+00> : vector<2x8x8xf32>
    %64 = tpu.matmul %61, %62, %cst_20 {dimension_numbers = #tpu.dot_dimension_numbers<[2], [2], [1], [1], [0, 0, 0, 1, 1, 1], [0], [0]>} : vector<2x8x8xf32>, vector<2x8x8xf32>, vector<2x8x8xf32> -> vector<2x8x8xf32>
    "tpu.trace_stop"() : () -> ()
    %cst_21 = arith.constant dense<0xFF800000> : vector<2x8xf32>
    %65 = vector.multi_reduction <maximumf>, %64, %cst_21 [2] : vector<2x8x8xf32> to vector<2x8xf32>
    %66 = vector.shape_cast %65 : vector<2x8xf32> to vector<2x8x1xf32>
    %67 = vector.broadcast %66 : vector<2x8x1xf32> to vector<2x8x8xf32>
    %68 = arith.subf %64, %67 : vector<2x8x8xf32>
    %69 = math.exp %68 : vector<2x8x8xf32>
    %cst_22 = arith.constant dense<0.000000e+00> : vector<2x8xf32>
    %70 = vector.multi_reduction <add>, %69, %cst_22 [2] : vector<2x8x8xf32> to vector<2x8xf32>
    %71 = vector.shape_cast %70 : vector<2x8xf32> to vector<2x8x1xf32>
    %72 = tpu.reciprocal %71 {approx = true} : vector<2x8x1xf32> -> vector<2x8x1xf32>
    %73 = vector.broadcast %72 : vector<2x8x1xf32> to vector<2x8x8xf32>
    %74 = arith.mulf %69, %73 : vector<2x8x8xf32>
    "tpu.trace_start"() <{level = 10 : i32, message = "bqk,bkd->bqd"}> : () -> ()
    %cst_23 = arith.constant dense<0.000000e+00> : vector<2x8x8xf32>
    %75 = tpu.matmul %74, %63, %cst_23 {dimension_numbers = #tpu.dot_dimension_numbers<[2], [1], [1], [2], [0, 0, 0, 1, 1, 2], [0], [0]>} : vector<2x8x8xf32>, vector<2x8x8xf32>, vector<2x8x8xf32> -> vector<2x8x8xf32>
    "tpu.trace_stop"() : () -> ()
    %76 = vector.shape_cast %75 : vector<2x8x8xf32> to vector<16x8xf32>
    %c8 = arith.constant 8 : index
    %c0_24 = arith.constant 0 : index
    %77 = vector.load %arg3[%c8, %c0_24] : memref<160x32xf32, #tpu.memory_space<vmem>>, vector<8x32xf32>
    %cst_25 = arith.constant dense<0.000000e+00> : vector<16x32xf32>
    %78 = tpu.matmul %76, %77, %cst_25 {dimension_numbers = #tpu.dot_dimension_numbers<[1], [0], [0], [1], [0, 0, 1, 1], [], []>} : vector<16x8xf32>, vector<8x32xf32>, vector<16x32xf32> -> vector<16x32xf32>
    %79 = arith.addf %60, %78 : vector<16x32xf32>
    %80 = vector.extract_strided_slice %36 {offsets = [0, 0, 16], sizes = [2, 8, 8], strides = [1, 1, 1]} : vector<2x8x32xf32> to vector<2x8x8xf32>
    %81 = vector.extract_strided_slice %38 {offsets = [0, 0, 16], sizes = [2, 8, 8], strides = [1, 1, 1]} : vector<2x8x32xf32> to vector<2x8x8xf32>
    %82 = vector.extract_strided_slice %40 {offsets = [0, 0, 16], sizes = [2, 8, 8], strides = [1, 1, 1]} : vector<2x8x32xf32> to vector<2x8x8xf32>
    "tpu.trace_start"() <{level = 10 : i32, message = "bqd,bkd->bqk"}> : () -> ()
    %cst_26 = arith.constant dense<0.000000e+00> : vector<2x8x8xf32>
    %83 = tpu.matmul %80, %81, %cst_26 {dimension_numbers = #tpu.dot_dimension_numbers<[2], [2], [1], [1], [0, 0, 0, 1, 1, 1], [0], [0]>} : vector<2x8x8xf32>, vector<2x8x8xf32>, vector<2x8x8xf32> -> vector<2x8x8xf32>
    "tpu.trace_stop"() : () -> ()
    %cst_27 = arith.constant dense<0xFF800000> : vector<2x8xf32>
    %84 = vector.multi_reduction <maximumf>, %83, %cst_27 [2] : vector<2x8x8xf32> to vector<2x8xf32>
    %85 = vector.shape_cast %84 : vector<2x8xf32> to vector<2x8x1xf32>
    %86 = vector.broadcast %85 : vector<2x8x1xf32> to vector<2x8x8xf32>
    %87 = arith.subf %83, %86 : vector<2x8x8xf32>
    %88 = math.exp %87 : vector<2x8x8xf32>
    %cst_28 = arith.constant dense<0.000000e+00> : vector<2x8xf32>
    %89 = vector.multi_reduction <add>, %88, %cst_28 [2] : vector<2x8x8xf32> to vector<2x8xf32>
    %90 = vector.shape_cast %89 : vector<2x8xf32> to vector<2x8x1xf32>
    %91 = tpu.reciprocal %90 {approx = true} : vector<2x8x1xf32> -> vector<2x8x1xf32>
    %92 = vector.broadcast %91 : vector<2x8x1xf32> to vector<2x8x8xf32>
    %93 = arith.mulf %88, %92 : vector<2x8x8xf32>
    "tpu.trace_start"() <{level = 10 : i32, message = "bqk,bkd->bqd"}> : () -> ()
    %cst_29 = arith.constant dense<0.000000e+00> : vector<2x8x8xf32>
    %94 = tpu.matmul %93, %82, %cst_29 {dimension_numbers = #tpu.dot_dimension_numbers<[2], [1], [1], [2], [0, 0, 0, 1, 1, 2], [0], [0]>} : vector<2x8x8xf32>, vector<2x8x8xf32>, vector<2x8x8xf32> -> vector<2x8x8xf32>
    "tpu.trace_stop"() : () -> ()
    %95 = vector.shape_cast %94 : vector<2x8x8xf32> to vector<16x8xf32>
    %c16 = arith.constant 16 : index
    %c0_30 = arith.constant 0 : index
    %96 = vector.load %arg3[%c16, %c0_30] : memref<160x32xf32, #tpu.memory_space<vmem>>, vector<8x32xf32>
    %cst_31 = arith.constant dense<0.000000e+00> : vector<16x32xf32>
    %97 = tpu.matmul %95, %96, %cst_31 {dimension_numbers = #tpu.dot_dimension_numbers<[1], [0], [0], [1], [0, 0, 1, 1], [], []>} : vector<16x8xf32>, vector<8x32xf32>, vector<16x32xf32> -> vector<16x32xf32>
    %98 = arith.addf %79, %97 : vector<16x32xf32>
    %99 = vector.extract_strided_slice %36 {offsets = [0, 0, 24], sizes = [2, 8, 8], strides = [1, 1, 1]} : vector<2x8x32xf32> to vector<2x8x8xf32>
    %100 = vector.extract_strided_slice %38 {offsets = [0, 0, 24], sizes = [2, 8, 8], strides = [1, 1, 1]} : vector<2x8x32xf32> to vector<2x8x8xf32>
    %101 = vector.extract_strided_slice %40 {offsets = [0, 0, 24], sizes = [2, 8, 8], strides = [1, 1, 1]} : vector<2x8x32xf32> to vector<2x8x8xf32>
    "tpu.trace_start"() <{level = 10 : i32, message = "bqd,bkd->bqk"}> : () -> ()
    %cst_32 = arith.constant dense<0.000000e+00> : vector<2x8x8xf32>
    %102 = tpu.matmul %99, %100, %cst_32 {dimension_numbers = #tpu.dot_dimension_numbers<[2], [2], [1], [1], [0, 0, 0, 1, 1, 1], [0], [0]>} : vector<2x8x8xf32>, vector<2x8x8xf32>, vector<2x8x8xf32> -> vector<2x8x8xf32>
    "tpu.trace_stop"() : () -> ()
    %cst_33 = arith.constant dense<0xFF800000> : vector<2x8xf32>
    %103 = vector.multi_reduction <maximumf>, %102, %cst_33 [2] : vector<2x8x8xf32> to vector<2x8xf32>
    %104 = vector.shape_cast %103 : vector<2x8xf32> to vector<2x8x1xf32>
    %105 = vector.broadcast %104 : vector<2x8x1xf32> to vector<2x8x8xf32>
    %106 = arith.subf %102, %105 : vector<2x8x8xf32>
    %107 = math.exp %106 : vector<2x8x8xf32>
    %cst_34 = arith.constant dense<0.000000e+00> : vector<2x8xf32>
    %108 = vector.multi_reduction <add>, %107, %cst_34 [2] : vector<2x8x8xf32> to vector<2x8xf32>
    %109 = vector.shape_cast %108 : vector<2x8xf32> to vector<2x8x1xf32>
    %110 = tpu.reciprocal %109 {approx = true} : vector<2x8x1xf32> -> vector<2x8x1xf32>
    %111 = vector.broadcast %110 : vector<2x8x1xf32> to vector<2x8x8xf32>
    %112 = arith.mulf %107, %111 : vector<2x8x8xf32>
    "tpu.trace_start"() <{level = 10 : i32, message = "bqk,bkd->bqd"}> : () -> ()
    %cst_35 = arith.constant dense<0.000000e+00> : vector<2x8x8xf32>
    %113 = tpu.matmul %112, %101, %cst_35 {dimension_numbers = #tpu.dot_dimension_numbers<[2], [1], [1], [2], [0, 0, 0, 1, 1, 2], [0], [0]>} : vector<2x8x8xf32>, vector<2x8x8xf32>, vector<2x8x8xf32> -> vector<2x8x8xf32>
    "tpu.trace_stop"() : () -> ()
    %114 = vector.shape_cast %113 : vector<2x8x8xf32> to vector<16x8xf32>
    %c24 = arith.constant 24 : index
    %c0_36 = arith.constant 0 : index
    %115 = vector.load %arg3[%c24, %c0_36] : memref<160x32xf32, #tpu.memory_space<vmem>>, vector<8x32xf32>
    %cst_37 = arith.constant dense<0.000000e+00> : vector<16x32xf32>
    %116 = tpu.matmul %114, %115, %cst_37 {dimension_numbers = #tpu.dot_dimension_numbers<[1], [0], [0], [1], [0, 0, 1, 1], [], []>} : vector<16x8xf32>, vector<8x32xf32>, vector<16x32xf32> -> vector<16x32xf32>
    %117 = arith.addf %98, %116 : vector<16x32xf32>
    %118 = arith.addf %1, %117 : vector<16x32xf32>
    %cst_38 = arith.constant dense<0.000000e+00> : vector<16xf32>
    %119 = vector.multi_reduction <add>, %118, %cst_38 [1] : vector<16x32xf32> to vector<16xf32>
    %120 = vector.shape_cast %119 : vector<16xf32> to vector<16x1xf32>
    %cst_39 = arith.constant 3.200000e+01 : f32
    %121 = vector.broadcast %cst_39 : f32 to vector<16x1xf32>
    %122 = arith.divf %120, %121 : vector<16x1xf32>
    %123 = vector.broadcast %122 : vector<16x1xf32> to vector<16x32xf32>
    %124 = arith.subf %118, %123 : vector<16x32xf32>
    %125 = arith.mulf %124, %124 : vector<16x32xf32>
    %cst_40 = arith.constant dense<0.000000e+00> : vector<16xf32>
    %126 = vector.multi_reduction <add>, %125, %cst_40 [1] : vector<16x32xf32> to vector<16xf32>
    %127 = vector.shape_cast %126 : vector<16xf32> to vector<16x1xf32>
    %cst_41 = arith.constant 3.200000e+01 : f32
    %128 = vector.broadcast %cst_41 : f32 to vector<16x1xf32>
    %129 = arith.divf %127, %128 : vector<16x1xf32>
    %130 = vector.broadcast %122 : vector<16x1xf32> to vector<16x32xf32>
    %131 = arith.subf %118, %130 : vector<16x32xf32>
    %cst_42 = arith.constant 9.99999974E-6 : f32
    %132 = vector.broadcast %cst_42 : f32 to vector<16x1xf32>
    %133 = arith.addf %129, %132 : vector<16x1xf32>
    %134 = math.rsqrt %133 : vector<16x1xf32>
    %135 = vector.broadcast %134 : vector<16x1xf32> to vector<16x32xf32>
    %136 = arith.mulf %131, %135 : vector<16x32xf32>
    %137 = vector.broadcast %5 : vector<1x32xf32> to vector<16x32xf32>
    %138 = arith.mulf %136, %137 : vector<16x32xf32>
    %139 = vector.broadcast %6 : vector<1x32xf32> to vector<16x32xf32>
    %140 = arith.addf %138, %139 : vector<16x32xf32>
    %c0_43 = arith.constant 0 : index
    %c128 = arith.constant 128 : index
    %141 = vector.load %arg2[%c0_43, %c128] : memref<32x256xf32, #tpu.memory_space<vmem>>, vector<32x128xf32>
    %cst_44 = arith.constant dense<0.000000e+00> : vector<16x128xf32>
    %142 = tpu.matmul %140, %141, %cst_44 {dimension_numbers = #tpu.dot_dimension_numbers<[1], [0], [0], [1], [0, 0, 1, 1], [], []>} : vector<16x32xf32>, vector<32x128xf32>, vector<16x128xf32> -> vector<16x128xf32>
    %143 = vector.broadcast %8 : vector<1x128xf32> to vector<16x128xf32>
    %144 = arith.addf %142, %143 : vector<16x128xf32>
    %cst_45 = arith.constant 5.000000e-01 : f32
    %145 = vector.broadcast %cst_45 : f32 to vector<16x128xf32>
    %146 = arith.mulf %145, %144 : vector<16x128xf32>
    %cst_46 = arith.constant 0.707106769 : f32
    %147 = vector.broadcast %cst_46 : f32 to vector<16x128xf32>
    %148 = arith.mulf %144, %147 : vector<16x128xf32>
    %149 = math.erf %148 : vector<16x128xf32>
    %cst_47 = arith.constant 1.000000e+00 : f32
    %150 = vector.broadcast %cst_47 : f32 to vector<16x128xf32>
    %151 = arith.addf %150, %149 : vector<16x128xf32>
    %152 = arith.mulf %146, %151 : vector<16x128xf32>
    %c32 = arith.constant 32 : index
    %c0_48 = arith.constant 0 : index
    %153 = vector.load %arg3[%c32, %c0_48] : memref<160x32xf32, #tpu.memory_space<vmem>>, vector<128x32xf32>
    %cst_49 = arith.constant dense<0.000000e+00> : vector<16x32xf32>
    %154 = tpu.matmul %152, %153, %cst_49 {dimension_numbers = #tpu.dot_dimension_numbers<[1], [0], [0], [1], [0, 0, 1, 1], [], []>} : vector<16x128xf32>, vector<128x32xf32>, vector<16x32xf32> -> vector<16x32xf32>
    %155 = vector.broadcast %7 : vector<1x32xf32> to vector<16x32xf32>
    %156 = arith.addf %154, %155 : vector<16x32xf32>
    %157 = arith.addf %118, %156 : vector<16x32xf32>
    %158 = vector.shape_cast %157 : vector<16x32xf32> to vector<2x8x32xf32>
    %c0_50 = arith.constant 0 : index
    %c0_51 = arith.constant 0 : index
    %c0_52 = arith.constant 0 : index
    %159 = vector.load %arg5[%c0_50, %c0_51, %c0_52] : memref<2x8x32xf32, #tpu.memory_space<vmem>>, vector<2x8x32xf32>
    tpu.vector_store %arg5[%c0_50, %c0_51, %c0_52], %158 {strides = array<i32>} : memref<2x8x32xf32, #tpu.memory_space<vmem>>, vector<2x8x32xf32>,
    return
  }
  func.func @transform_0(%arg0: i32) -> (i32, i32, i32) {
    %c0_i32 = arith.constant 0 : i32
    %c0_i32_0 = arith.constant 0 : i32
    %c0_i32_1 = arith.constant 0 : i32
    return %arg0, %c0_i32, %c0_i32_0 : i32, i32, i32
  }
  func.func @transform_1(%arg0: i32) -> (i32, i32) {
    %c0_i32 = arith.constant 0 : i32
    %c0_i32_0 = arith.constant 0 : i32
    %c0_i32_1 = arith.constant 0 : i32
    return %c0_i32, %c0_i32_0 : i32, i32
  }
  func.func @transform_2(%arg0: i32) -> (i32, i32) {
    %c0_i32 = arith.constant 0 : i32
    %c0_i32_0 = arith.constant 0 : i32
    %c0_i32_1 = arith.constant 0 : i32
    return %c0_i32, %c0_i32_0 : i32, i32
  }
  func.func @transform_3(%arg0: i32) -> (i32, i32) {
    %c0_i32 = arith.constant 0 : i32
    %c0_i32_0 = arith.constant 0 : i32
    %c0_i32_1 = arith.constant 0 : i32
    return %c0_i32, %c0_i32_0 : i32, i32
  }
  func.func @transform_4(%arg0: i32) -> (i32, i32, i32) {
    %c0_i32 = arith.constant 0 : i32
    %c0_i32_0 = arith.constant 0 : i32
    %c0_i32_1 = arith.constant 0 : i32
    return %arg0, %c0_i32, %c0_i32_0 : i32, i32, i32
  }
}

</mosaic_0001>

<bundles_post_ra>
// kernel: encoder_forward.1
= control target key start
LH: loop header
LB: loop body
LE: loop exit
PB: predicated region body
PF: predicated region fallthrough
CT: control target
= control target key end

     0   :  { %vm21_vm0 = vcmask 261120   ;;  %s1416_s0 = inlined_call_operand.vmem [shape: f32[2,8,32], index: 0, kind: input, shape index: {}]   ;;  %s1417_s1 = inlined_call_operand.vmem [shape: f32[32,256], index: 1, kind: input, shape index: {}]   ;;  %s1418_s2 = inlined_call_operand.vmem [shape: f32[160,32], index: 2, kind: input, shape index: {}]   ;;  %s1419_s3 = inlined_call_operand.vmem [shape: f32[8,128], index: 3, kind: input, shape index: {}]   ;;  %s1420_s4 = inlined_call_operand.hbm [shape: f32[2,8,32], index: 4, kind: output, shape index: {}]  }
   0x1   :  { %v1163_v0 = vld [vmem:[%s1416_s0] sm:$0xff] }
   0x2   :  { %9 = vsyncpa [#allocation3], 0  ;;  %v22_v1 = vsel %vm21_vm0, %v1163_v0, 0.0  ;;  %v1170_v2 = vld [vmem:[%s1416_s0 + $0x8] sm:$0xff]  ;;  %v1120_v4 = vmov 32.0   ;;  %v82_v21 = vld [vmem:[%s1417_s1 + $0x30] sm:$0xff] }
   0x3   :  { %23 = vadd.xlane.f32.xlu0 %v22_v1  ;;  %v25_v3 = vsel %vm21_vm0, %v1170_v2, 0.0  ;;  %1048 = vrcp.f32 %v1120_v4  ;;  %101 = vmatpush.msra.mxu0 %v82_v21  ;;  %v81_v22 = vld [vmem:[%s1417_s1 + $0x20] sm:$0xff]  ;;  %v80_v23 = vld [vmem:[%s1417_s1 + $0x10] sm:$0xff]  ;;  %s1122_s28 = smov 96   ;;  %s1123_s29 = smov 120   ;;  %vm117_vm8 = vcmask 64512  }
   0x4   :  { %v79_v24 = vld [vmem:[%s1417_s1] sm:$0xff]  ;;  %s1124_s30 = smov 64   ;;  %s1125_s5 = smov 80  }
   0x5   :  { %102 = vmatpush.msra.mxu0 %v81_v22  ;;  %v1199_v36 = vld [vmem:[%s1419_s3] sm:$0xff]  ;;  %s1121_s3 = smov 88   ;;  %s1126_s6 = smov 112  }
   0x6   :  { %v73_v40 = vperm.slane %v1199_v36, 0  ;;  %v76_v44 = vperm.slane %v1199_v36, 1  ;;  %s1127_s7 = smov 56   ;;  %s1128_s8 = smov 72  }
   0x7   :  { %103 = vmatpush.msra.mxu0 %v80_v23  ;;  %s1129_s13 = smov 48   ;;  %s1130_s14 = smov 104  }
   0x8   :  { %s1131_s17 = smov 40  }
   0x9   :  { %v1049_v5 = vpop.eup %1048  ;;  %104 = vmatpush.msra.mxu0 %v79_v24 }
   0xa   :  { %v29_v6 = vmul.f32 32.0, %v1049_v5  ;;  %vm33_vm1 = vweird.f32 %v1049_v5 }
   0xb   :  { %26 = vadd.xlane.f32.xlu0 %v25_v3 }
   0xc   :  { %v30_v7 = vsub.f32 1.0, %v29_v6 }
   0xe   :  { %v31_v8 = vmul.f32 %v1049_v5, %v30_v7 }
  0x10   :  { %v32_v9 = vadd.f32 %v1049_v5, %v31_v8 }
  0x12   :  { %v1174_v10 = vsel %vm33_vm1, %v1049_v5, %v32_v9 }
  0x76   :  { %v24_v11 = vpop.xlane.xlu0 %23 }
  0x77   :  { %v35_v12 = vmul.f32 %v1174_v10, %v24_v11 }
  0x79   :  { %v37_v13 = vsub.f32 %v1163_v0, %v35_v12 }
  0x7b   :  { %v39_v14 = vmul.f32 %v37_v13, %v37_v13 }
  0x7d   :  { %v41_v15 = vsel %vm21_vm0, %v39_v14, 0.0 }
  0x7e   :  { %42 = vadd.xlane.f32.xlu1 %v41_v15  ;;  %v27_v16 = vpop.xlane.xlu0 %26 }
  0x7f   :  { %v36_v17 = vmul.f32 %v1174_v10, %v27_v16 }
  0x81   :  { %v38_v18 = vsub.f32 %v1170_v2, %v36_v17 }
  0x83   :  { %v40_v19 = vmul.f32 %v38_v18, %v38_v18 }
  0x85   :  { %v44_v20 = vsel %vm21_vm0, %v40_v19, 0.0 }
  0x86   :  { %45 = vadd.xlane.f32.xlu1 %v44_v20 }
  0xf1   :  { %v43_v25 = vpop.xlane.xlu1 %42 }
  0xf2   :  { %v47_v26 = vmul.f32 %v43_v25, %v1174_v10 }
  0xf4   :  { %v49_v27 = vadd.f32 1e-05, %v47_v26 }
  0xf6   :  { %1050 = vrsqrt.f32 %v49_v27  ;;  %vm57_vm3 = vweird.f32 %v49_v27 }
  0xf9   :  { %v46_v28 = vpop.xlane.xlu1 %45 }
  0xfa   :  { %v48_v29 = vmul.f32 %v46_v28, %v1174_v10 }
  0xfc   :  { %v1051_v30 = vpop.eup %1050  ;;  %v50_v31 = vadd.f32 1e-05, %v48_v29 }
  0xfd   :  { %v52_v32 = vmul.f32 %v1051_v30, %v49_v27  ;;  %vm58_vm2 = vweird.f32 %v1051_v30 }
  0xfe   :  { %1052 = vrsqrt.f32 %v50_v31  ;;  %vm59_vm4 = vmor %vm57_vm3, %vm58_vm2  ;;  %vm67_vm5 = vweird.f32 %v50_v31 }
  0xff   :  { %v53_v33 = vmul.f32 %v1051_v30, %v52_v32 }
 0x101   :  { %v54_v34 = vmul.f32 0.5, %v53_v33 }
 0x103   :  { %v55_v35 = vsub.f32 1.5, %v54_v34 }
 0x104   :  { %v1053_v37 = vpop.eup %1052 }
 0x105   :  { %v56_v38 = vmul.f32 %v1051_v30, %v55_v35  ;;  %v62_v39 = vmul.f32 %v1053_v37, %v50_v31  ;;  %vm68_vm6 = vweird.f32 %v1053_v37 }
 0x106   :  { %vm69_vm7 = vmor %vm67_vm5, %vm68_vm6 }
 0x107   :  { %v60_v41 = vsel %vm59_vm4, %v1051_v30, %v56_v38  ;;  %v63_v42 = vmul.f32 %v1053_v37, %v62_v39 }
 0x108   :  { %v71_v43 = vmul.f32 %v60_v41, %v37_v13 }
 0x109   :  { %v64_v45 = vmul.f32 0.5, %v63_v42 }
 0x10a   :  { %v74_v46 = vmul.f32 %v73_v40, %v71_v43 }
 0x10b   :  { %v65_v47 = vsub.f32 1.5, %v64_v45 }
 0x10c   :  { %v77_v48 = vadd.f32 %v76_v44, %v74_v46 }
 0x10d   :  { %v66_v49 = vmul.f32 %v1053_v37, %v65_v47  ;;  %v376_v47 = vld [vmem:[%s1418_s2 + $0x8] sm:$0xff] }
 0x10e   :  { %995 = vmatmul.msk.f32.vlgmr.msra.gmra.mxu0 %vm21_vm0, %v77_v48 }
 0x10f   :  { %v70_v50 = vsel %vm69_vm7, %v1053_v37, %v66_v49  ;;  %398 = vmatpush.msrb.mxu0 %v376_v47 }
 0x110   :  { %v72_v51 = vmul.f32 %v70_v50, %v38_v18 }
 0x112   :  { %v75_v52 = vmul.f32 %v73_v40, %v72_v51  ;;  %v245_v51 = vld [vmem:[%s1418_s2] sm:$0xff] }
 0x113   :  { %427 = vmatpush.msra.mxu0 %v245_v51 }
 0x114   :  { %v78_v53 = vadd.f32 %v76_v44, %v75_v52 }
 0x116   :  { %996 = vmatmul.msk.f32.gmra.mxu0 %vm21_vm0, %v78_v53 }
 0x18b   :  { %v1205_v54 = vpop.f32.mrf.mxu0 }
 0x18c   :  { %248 = vrot.lane.b32.xlu0 %v1205_v54, %s1121_s3  ;;  %115 = vrot.lane.b32.xlu2 %v1205_v54, %s1122_s28  ;;  %v1210_v55 = vmul.f32 0.35355338, %v1205_v54 }
 0x18e   :  { %246 = vrot.lane.b32.xlu1 %v1210_v55, %s1123_s29 }
 0x193   :  { %v1213_v56 = vpop.f32.mrf.mxu0 }
 0x194   :  { %144 = vrot.lane.b32.xlu2 %v1213_v56, %s1122_s28  ;;  %v1218_v57 = vmul.f32 0.35355338, %v1213_v56 }
 0x19c   :  { %276 = vrot.lane.b32.xlu2 %v1213_v56, %s1121_s3 }
 0x1a4   :  { %274 = vrot.lane.b32.xlu2 %v1218_v57, %s1123_s29 }
 0x1e6   :  { %v116_v58 = vpop.permute.xlu2 %115 }
 0x1e7   :  { %997 = vmatpush.xpose.msk.msra.mxu1 %vm117_vm8, %v116_v58 }
 0x1ea   :  { %998 = vmatmul.msk.f32.vlgmr.msra.gmra.mxu1 %vm117_vm8, %v1210_v55 }
 0x1ee   :  { %v145_v59 = vpop.permute.xlu2 %144 }
 0x1ef   :  { %999 = vmatpush.xpose.msk.msra.mxu2 %vm117_vm8, %v145_v59 }
 0x1f2   :  { %1000 = vmatmul.msk.f32.vlgmr.msra.gmra.mxu2 %vm117_vm8, %v1218_v57 }
 0x1f6   :  { %v277_v60 = vpop.permute.xlu2 %276 }
 0x1f7   :  { %1005 = vmatpush.xpose.msk.msrb.mxu2 %vm117_vm8, %v277_v60 }
 0x1fe   :  { %v275_v61 = vpop.permute.xlu2 %274  ;;  %v249_v62 = vpop.permute.xlu0 %248 }
 0x1ff   :  { %1003 = vmatpush.xpose.msk.msrb.mxu1 %vm117_vm8, %v249_v62  ;;  %1006 = vmatmul.msk.f32.vlgmr.msrb.gmra.mxu2 %vm117_vm8, %v275_v61 }
 0x200   :  { %v247_v63 = vpop.permute.xlu1 %246 }
 0x202   :  { %1004 = vmatmul.msk.f32.vlgmr.msrb.gmra.mxu1 %vm117_vm8, %v247_v63 }
 0x267   :  { %v140_v1 = vpop.f32.mrf.mxu1 }
 0x268   :  { %v171_v3 = vsel %vm117_vm8, %v140_v1, -inf }
 0x269   :  { %172 = vmax.xlane.f32.xlu2 %v171_v3 }
 0x275   :  { %v168_v4 = vpop.f32.mrf.mxu2 }
 0x276   :  { %v174_v5 = vsel %vm117_vm8, %v168_v4, -inf }
 0x277   :  { %175 = vmax.xlane.f32.xlu0 %v174_v5 }
 0x27f   :  { %v271_v6 = vpop.f32.mrf.mxu1 }
 0x280   :  { %v302_v7 = vsel %vm117_vm8, %v271_v6, -inf }
 0x281   :  { %193 = vrot.lane.b32.xlu2 %v1205_v54, %s1124_s30  ;;  %303 = vmax.xlane.f32.xlu1 %v302_v7 }
 0x282   :  { %v299_v26 = vpop.f32.mrf.mxu2 }
 0x283   :  { %v305_v27 = vsel %vm117_vm8, %v299_v26, -inf }
 0x28b   :  { %219 = vrot.lane.b32.xlu0 %v1213_v56, %s1124_s30 }
 0x2dc   :  { %v173_v8 = vpop.xlane.xlu2 %172 }
 0x2dd   :  { %v177_v9 = vsub.f32 %v140_v1, %v173_v8 }
 0x2df   :  { %v179_v11 = vmul.f32 1.442695, %v177_v9 }
 0x2e1   :  { %1054 = vpow2.f32 %v179_v11 }
 0x2e4   :  { %v194_v12 = vpop.permute.xlu2 %193 }
 0x2e5   :  { %214 = vmatpush.msra.mxu3 %v194_v12 }
 0x2e7   :  { %v1055_v13 = vpop.eup %1054 }
 0x2e8   :  { %v183_v14 = vsel %vm117_vm8, %v1055_v13, 0.0 }
 0x2e9   :  { %184 = vadd.xlane.f32.xlu2 %v183_v14 }
 0x2ea   :  { %v176_v15 = vpop.xlane.xlu0 %175 }
 0x2eb   :  { %v178_v16 = vsub.f32 %v168_v4, %v176_v15 }
 0x2ed   :  { %v181_v17 = vmul.f32 1.442695, %v178_v16 }
 0x2ef   :  { %1056 = vpow2.f32 %v181_v17 }
 0x2f4   :  { %v304_v18 = vpop.xlane.xlu1 %303 }
 0x2f5   :  { %v1057_v19 = vpop.eup %1056  ;;  %v308_v20 = vsub.f32 %v271_v6, %v304_v18 }
 0x2f6   :  { %v186_v21 = vsel %vm117_vm8, %v1057_v19, 0.0 }
 0x2f7   :  { %v310_v22 = vmul.f32 1.442695, %v308_v20  ;;  %187 = vadd.xlane.f32.xlu0 %v186_v21 }
 0x2f9   :  { %1058 = vpow2.f32 %v310_v22 }
 0x2fd   :  { %v220_v23 = vpop.permute.xlu0 %219 }
 0x2fe   :  { %240 = vmatpush.msrb.mxu3 %v220_v23 }
 0x2ff   :  { %v1059_v24 = vpop.eup %1058 }
 0x300   :  { %v314_v25 = vsel %vm117_vm8, %v1059_v24, 0.0 }
 0x301   :  { %437 = vrot.lane.b32.xlu2 %v1205_v54, %s1125_s5  ;;  %315 = vadd.xlane.f32.xlu1 %v314_v25  ;;  %v565_v25 = vld [vmem:[%s1418_s2 + $0x10] sm:$0xff] }
 0x302   :  { %587 = vmatpush.msra.mxu2 %v565_v25 }
 0x30b   :  { %435 = vrot.lane.b32.xlu0 %v1210_v55, %s1126_s6 }
 0x31a   :  { %324 = vrot.lane.b32.xlu1 %v1205_v54, %s1127_s7 }
 0x322   :  { %350 = vrot.lane.b32.xlu1 %v1213_v56, %s1127_s7  ;;  %s1134_s7 = smov 8  }
 0x32a   :  { %306 = vmax.xlane.f32.xlu2 %v305_v27 }
 0x342   :  { %463 = vrot.lane.b32.xlu2 %v1218_v57, %s1126_s6  ;;  %s1133_s6 = smov 128  }
 0x35c   :  { %v185_v28 = vpop.xlane.xlu2 %184 }
 0x35d   :  { %1060 = vrcp.f32 %v185_v28 }
 0x363   :  { %v1061_v29 = vpop.eup %1060 }
 0x364   :  { %v191_v30 = vmul.f32 %v1061_v29, %v1055_v13  ;;  %v438_v39 = vpop.permute.xlu2 %437 }
 0x366   :  { %1001 = vmatmul.msk.f32.vlgmr.msra.gmra.mxu3 %vm117_vm8, %v191_v30 }
 0x36a   :  { %v188_v31 = vpop.xlane.xlu0 %187 }
 0x36b   :  { %1062 = vrcp.f32 %v188_v31 }
 0x371   :  { %v1063_v32 = vpop.eup %1062 }
 0x372   :  { %v192_v33 = vmul.f32 %v1063_v32, %v1057_v19 }
 0x374   :  { %1002 = vmatmul.msk.f32.vlgmr.msrb.gmra.mxu3 %vm117_vm8, %v192_v33  ;;  %v316_v34 = vpop.xlane.xlu1 %315 }
 0x375   :  { %1064 = vrcp.f32 %v316_v34 }
 0x37b   :  { %v1065_v35 = vpop.eup %1064 }
 0x37c   :  { %v322_v37 = vmul.f32 %v1065_v35, %v1059_v24 }
 0x37d   :  { %v436_v41 = vpop.permute.xlu0 %435 }
 0x38c   :  { %v325_v38 = vpop.permute.xlu1 %324 }
 0x38d   :  { %345 = vmatpush.msra.mxu3 %v325_v38 }
 0x38e   :  { %1007 = vmatmul.msk.f32.vlgmr.msra.gmra.mxu3 %vm117_vm8, %v322_v37 }
 0x38f   :  { %1013 = vmatpush.xpose.msk.msrb.mxu3 %vm117_vm8, %v438_v39 }
 0x394   :  { %v351_v40 = vpop.permute.xlu1 %350 }
 0x395   :  { %371 = vmatpush.msra.mxu1 %v351_v40 }
 0x396   :  { %1014 = vmatmul.msk.f32.vlgmr.msrb.gmra.mxu3 %vm117_vm8, %v436_v41 }
 0x39d   :  { %v307_v42 = vpop.xlane.xlu2 %306 }
 0x39e   :  { %v309_v43 = vsub.f32 %v299_v26, %v307_v42 }
 0x3a0   :  { %v312_v44 = vmul.f32 1.442695, %v309_v43 }
 0x3a2   :  { %1066 = vpow2.f32 %v312_v44 }
 0x3a5   :  { %v464_v62 = vpop.permute.xlu2 %463 }
 0x3a8   :  { %v1067_v45 = vpop.eup %1066 }
 0x3a9   :  { %v317_v46 = vsel %vm117_vm8, %v1067_v45, 0.0 }
 0x3aa   :  { %318 = vadd.xlane.f32.xlu0 %v317_v46 }
 0x3be   :  { %465 = vrot.lane.b32.xlu0 %v1213_v56, %s1125_s5  ;;  %s983_s5 = sshll.u32 %s1420_s4, 4  ;;  %s984_s5 = int_to_ptr.hbm [resolvable:$true] %s983_s5 }
 0x3c6   :  { %599 = vrot.lane.b32.xlu0 %v1205_v54, %s1128_s8 }
 0x3ce   :  { %627 = vrot.lane.b32.xlu0 %v1213_v56, %s1128_s8 }
 0x3e9   :  { %v216_v48 = vpop.f32.mrf.mxu3 }
 0x3f7   :  { %v242_v49 = vpop.f32.mrf.mxu3 }
 0x411   :  { %v347_v50 = vpop.f32.mrf.mxu3 }
 0x412   :  { %1009 = vmatmul.msk.f32.vlgmr.msrb.gmra.mxu0 %vm117_vm8, %v347_v50 }
 0x419   :  { %v460_v52 = vpop.f32.mrf.mxu3 }
 0x41a   :  { %v491_v53 = vsel %vm117_vm8, %v460_v52, -inf }
 0x41b   :  { %492 = vmax.xlane.f32.xlu1 %v491_v53 }
 0x41d   :  { %v319_v58 = vpop.xlane.xlu0 %318 }
 0x41e   :  { %1068 = vrcp.f32 %v319_v58 }
 0x424   :  { %v1069_v59 = vpop.eup %1068 }
 0x425   :  { %v323_v60 = vmul.f32 %v1069_v59, %v1067_v45 }
 0x427   :  { %1008 = vmatmul.msk.f32.vlgmr.msra.gmra.mxu1 %vm117_vm8, %v323_v60 }
 0x430   :  { %v466_v61 = vpop.permute.xlu0 %465 }
 0x431   :  { %1015 = vmatpush.xpose.msk.msrb.mxu1 %vm117_vm8, %v466_v61 }
 0x434   :  { %513 = vrot.lane.b32.xlu1 %v1205_v54, %s1129_s13  ;;  %1016 = vmatmul.msk.f32.vlgmr.msrb.gmra.mxu1 %vm117_vm8, %v464_v62 }
 0x438   :  { %v600_v63 = vpop.permute.xlu0 %599 }
 0x439   :  { %1021 = vmatpush.xpose.msk.msrb.mxu0 %vm117_vm8, %v600_v63 }
 0x43c   :  { %625 = vrot.lane.b32.xlu1 %v1218_v57, %s1130_s14 }
 0x440   :  { %v628_v9 = vpop.permute.xlu0 %627 }
 0x48e   :  { %v493_v1 = vpop.xlane.xlu1 %492 }
 0x48f   :  { %v497_v3 = vsub.f32 %v460_v52, %v493_v1  ;;  %v400_v16 = vpop.f32.mrf.mxu0 }
 0x491   :  { %v499_v4 = vmul.f32 1.442695, %v497_v3 }
 0x493   :  { %1070 = vpow2.f32 %v499_v4 }
 0x499   :  { %v1071_v5 = vpop.eup %1070 }
 0x49a   :  { %v503_v6 = vsel %vm117_vm8, %v1071_v5, 0.0 }
 0x49b   :  { %504 = vadd.xlane.f32.xlu2 %v503_v6 }
 0x4a4   :  { %v373_v7 = vpop.f32.mrf.mxu1 }
 0x4a5   :  { %1010 = vmatmul.msk.f32.gmra.mxu0 %vm117_vm8, %v373_v7 }
 0x4a6   :  { %v514_v8 = vpop.permute.xlu1 %513 }
 0x4a7   :  { %534 = vmatpush.msra.mxu3 %v514_v8 }
 0x4a9   :  { %1023 = vmatpush.xpose.msk.msrb.mxu3 %vm117_vm8, %v628_v9 }
 0x4ad   :  { %1011 = vmatmul.msk.f32.vlgmr.msra.gmra.mxu0 %vm117_vm8, %v216_v48 }
 0x4ae   :  { %v626_v17 = vpop.permute.xlu1 %625 }
 0x4b1   :  { %v488_v11 = vpop.f32.mrf.mxu1 }
 0x4b2   :  { %v494_v57 = vsel %vm117_vm8, %v488_v11, -inf }
 0x4b3   :  { %597 = vrot.lane.b32.xlu2 %v1210_v55, %s1130_s14  ;;  %495 = vmax.xlane.f32.xlu0 %v494_v57 }
 0x4b5   :  { %1012 = vmatmul.msk.f32.gmra.mxu0 %vm117_vm8, %v242_v49 }
 0x50e   :  { %v505_v12 = vpop.xlane.xlu2 %504 }
 0x50f   :  { %1072 = vrcp.f32 %v505_v12 }
 0x515   :  { %v1073_v13 = vpop.eup %1072 }
 0x516   :  { %v511_v14 = vmul.f32 %v1073_v13, %v1071_v5  ;;  %v598_v15 = vpop.permute.xlu2 %597 }
 0x517   :  { %1022 = vmatmul.msk.f32.vlgmr.msrb.gmra.mxu0 %vm117_vm8, %v598_v15 }
 0x518   :  { %1017 = vmatmul.msk.f32.vlgmr.msra.gmra.mxu3 %vm117_vm8, %v511_v14 }
 0x520   :  { %1024 = vmatmul.msk.f32.vlgmr.msrb.gmra.mxu3 %vm117_vm8, %v626_v17 }
 0x522   :  { %v1281_v18 = vpop.f32.mrf.mxu0 }
 0x526   :  { %v496_v19 = vpop.xlane.xlu0 %495 }
 0x527   :  { %v498_v55 = vsub.f32 %v488_v11, %v496_v19 }
 0x529   :  { %v501_v20 = vmul.f32 1.442695, %v498_v55  ;;  %v814_v55 = vld [vmem:[%s1417_s1 + $0x38] sm:$0xff] }
 0x52a   :  { %v429_v21 = vpop.f32.mrf.mxu0 }
 0x52b   :  { %1074 = vpow2.f32 %v501_v20  ;;  %v1283_v22 = vadd.f32 %v429_v21, %v400_v16  ;;  %v813_v20 = vld [vmem:[%s1417_s1 + $0x28] sm:$0xff]  ;;  %v812_v21 = vld [vmem:[%s1417_s1 + $0x18] sm:$0xff] }
 0x531   :  { %v1075_v23 = vpop.eup %1074 }
 0x532   :  { %v506_v24 = vsel %vm117_vm8, %v1075_v23, 0.0  ;;  %v1289_v26 = vpop.f32.mrf.mxu0 }
 0x533   :  { %507 = vadd.xlane.f32.xlu0 %v506_v24  ;;  %v433_v6 = vadd.f32 %v1289_v26, %v1281_v18 }
 0x594   :  { %v622_v27 = vpop.f32.mrf.mxu0 }
 0x595   :  { %v653_v28 = vsel %vm117_vm8, %v622_v27, -inf }
 0x596   :  { %654 = vmax.xlane.f32.xlu2 %v653_v28 }
 0x59b   :  { %v536_v29 = vpop.f32.mrf.mxu3 }
 0x59c   :  { %1019 = vmatmul.msk.f32.vlgmr.msra.gmra.mxu2 %vm117_vm8, %v536_v29 }
 0x5a3   :  { %v650_v30 = vpop.f32.mrf.mxu3 }
 0x5a4   :  { %v656_v31 = vsel %vm117_vm8, %v650_v30, -inf }
 0x5a5   :  { %657 = vmax.xlane.f32.xlu1 %v656_v31 }
 0x5a6   :  { %v508_v42 = vpop.xlane.xlu0 %507 }
 0x5be   :  { %539 = vrot.lane.b32.xlu1 %v1213_v56, %s1129_s13 }
 0x609   :  { %v655_v32 = vpop.xlane.xlu2 %654 }
 0x60a   :  { %v659_v33 = vsub.f32 %v622_v27, %v655_v32  ;;  %v805_v32 = vperm.slane %v1199_v36, 2 }
 0x60c   :  { %v661_v34 = vmul.f32 1.442695, %v659_v33 }
 0x60e   :  { %1076 = vpow2.f32 %v661_v34 }
 0x614   :  { %v1077_v35 = vpop.eup %1076 }
 0x615   :  { %v665_v37 = vsel %vm117_vm8, %v1077_v35, 0.0 }
 0x616   :  { %666 = vadd.xlane.f32.xlu2 %v665_v37 }
 0x618   :  { %v658_v38 = vpop.xlane.xlu1 %657 }
 0x619   :  { %v660_v39 = vsub.f32 %v650_v30, %v658_v38 }
 0x61b   :  { %v663_v40 = vmul.f32 1.442695, %v660_v39 }
 0x61d   :  { %1078 = vpow2.f32 %v663_v40 }
 0x61e   :  { %1080 = vrcp.f32 %v508_v42 }
 0x61f   :  { %v589_v61 = vpop.f32.mrf.mxu2 }
 0x620   :  { %v595_v62 = vadd.f32 %v589_v61, %v1283_v22  ;;  %v811_v22 = vld [vmem:[%s1417_s1 + $0x8] sm:$0xff]  ;;  %v943_v61 = vld [vmem:[%s1418_s2 + $0x70] sm:$0xff] }
 0x623   :  { %v1079_v41 = vpop.eup %1078 }
 0x624   :  { %v668_v43 = vsel %vm117_vm8, %v1079_v41, 0.0  ;;  %v1081_v44 = vpop.eup %1080 }
 0x625   :  { %669 = vadd.xlane.f32.xlu0 %v668_v43  ;;  %v512_v45 = vmul.f32 %v1081_v44, %v1075_v23 }
 0x62e   :  { %675 = vrot.lane.b32.xlu2 %v1205_v54, %s1131_s17 }
 0x630   :  { %v540_v46 = vpop.permute.xlu1 %539 }
 0x631   :  { %560 = vmatpush.msra.mxu1 %v540_v46 }
 0x632   :  { %1018 = vmatmul.msk.f32.vlgmr.msra.gmra.mxu1 %vm117_vm8, %v512_v45 }
 0x639   :  { %701 = vrot.lane.b32.xlu0 %v1213_v56, %s1131_s17  ;;  %v727_v56 = vld [vmem:[%s1418_s2 + $0x18] sm:$0xff] }
 0x63a   :  { %749 = vmatpush.msra.mxu3 %v727_v56  ;;  %v944_v56 = vld [vmem:[%s1418_s2 + $0x78] sm:$0xff] }
 0x689   :  { %v667_v47 = vpop.xlane.xlu2 %666 }
 0x68a   :  { %1082 = vrcp.f32 %v667_v47 }
 0x690   :  { %v1083_v48 = vpop.eup %1082 }
 0x691   :  { %v673_v49 = vmul.f32 %v1083_v48, %v1077_v35  ;;  %v676_v50 = vpop.permute.xlu2 %675  ;;  %v808_v35 = vperm.slane %v1199_v36, 3 }
 0x692   :  { %696 = vmatpush.msrb.mxu1 %v676_v50 }
 0x693   :  { %1025 = vmatmul.msk.f32.vlgmr.msrb.gmra.mxu1 %vm117_vm8, %v673_v49 }
 0x694   :  { %834 = vmatpush.msra.mxu1 %v814_v55 }
 0x696   :  { %835 = vmatpush.msra.mxu1 %v813_v20 }
 0x698   :  { %v670_v51 = vpop.xlane.xlu0 %669  ;;  %836 = vmatpush.msra.mxu1 %v812_v21  ;;  %v934_v21 = vld [vmem:[%s1418_s2 + $0x28] sm:$0xff] }
 0x699   :  { %1084 = vrcp.f32 %v670_v51 }
 0x69a   :  { %837 = vmatpush.msra.mxu1 %v811_v22 }
 0x69f   :  { %v1085_v52 = vpop.eup %1084 }
 0x6a0   :  { %v674_v53 = vmul.f32 %v1085_v52, %v1079_v41  ;;  %v947_v52 = vld [vmem:[%s1418_s2 + $0x90] sm:$0xff] }
 0x6ab   :  { %v702_v54 = vpop.permute.xlu0 %701 }
 0x6ac   :  { %722 = vmatpush.msra.mxu0 %v702_v54  ;;  %v815_v54 = vperm.slane %v1199_v36, 5 }
 0x6ad   :  { %1026 = vmatmul.msk.f32.vlgmr.msra.gmra.mxu0 %vm117_vm8, %v674_v53  ;;  %v946_v53 = vld [vmem:[%s1418_s2 + $0x88] sm:$0xff] }
 0x6af   :  { %v562_v58 = vpop.f32.mrf.mxu1 }
 0x6b0   :  { %1020 = vmatmul.msk.f32.gmra.mxu2 %vm117_vm8, %v562_v58  ;;  %v945_v58 = vld [vmem:[%s1418_s2 + $0x80] sm:$0xff] }
 0x710   :  { %v698_v59 = vpop.f32.mrf.mxu1 }
 0x711   :  { %1027 = vmatmul.msk.f32.vlgmr.msra.gmra.mxu3 %vm117_vm8, %v698_v59 }
 0x72a   :  { %v724_v60 = vpop.f32.mrf.mxu0 }
 0x72b   :  { %1028 = vmatmul.msk.f32.gmra.mxu3 %vm117_vm8, %v724_v60 }
 0x733   :  { %v592_v5 = vpop.f32.mrf.mxu2 }
 0x734   :  { %v596_v7 = vadd.f32 %v592_v5, %v433_v6  ;;  %v940_v6 = vld [vmem:[%s1418_s2 + $0x58] sm:$0xff] }
 0x794   :  { %v751_v63 = vpop.f32.mrf.mxu3 }
 0x795   :  { %v757_v1 = vadd.f32 %v751_v63, %v595_v62  ;;  %v942_v63 = vld [vmem:[%s1418_s2 + $0x68] sm:$0xff] }
 0x797   :  { %v1311_v3 = vadd.f32 %v757_v1, %v1163_v0 }
 0x799   :  { %v761_v4 = vsel %vm21_vm0, %v1311_v3, 0.0 }
 0x79a   :  { %762 = vadd.xlane.f32.xlu1 %v761_v4  ;;  %v941_v4 = vld [vmem:[%s1418_s2 + $0x60] sm:$0xff] }
 0x7ae   :  { %v754_v8 = vpop.f32.mrf.mxu3 }
 0x7af   :  { %v758_v9 = vadd.f32 %v754_v8, %v596_v7 }
 0x7b1   :  { %v1318_v11 = vadd.f32 %v758_v9, %v1170_v2  ;;  %v939_v9 = vld [vmem:[%s1418_s2 + $0x50] sm:$0xff] }
 0x7b3   :  { %v764_v57 = vsel %vm21_vm0, %v1318_v11, 0.0 }
 0x7b4   :  { %765 = vadd.xlane.f32.xlu2 %v764_v57 }
 0x80d   :  { %v763_v0 = vpop.xlane.xlu1 %762 }
 0x80e   :  { %v767_v12 = vmul.f32 %v763_v0, %v1174_v10 }
 0x810   :  { %v769_v13 = vsub.f32 %v1311_v3, %v767_v12  ;;  %v938_v12 = vld [vmem:[%s1418_s2 + $0x48] sm:$0xff] }
 0x812   :  { %v771_v14 = vmul.f32 %v769_v13, %v769_v13 }
 0x814   :  { %v773_v15 = vsel %vm21_vm0, %v771_v14, 0.0 }
 0x815   :  { %774 = vadd.xlane.f32.xlu0 %v773_v15  ;;  %v937_v15 = vld [vmem:[%s1418_s2 + $0x40] sm:$0xff] }
 0x827   :  { %v766_v16 = vpop.xlane.xlu2 %765 }
 0x828   :  { %v768_v17 = vmul.f32 %v766_v16, %v1174_v10 }
 0x82a   :  { %v770_v18 = vsub.f32 %v1318_v11, %v768_v17 }
 0x82c   :  { %v772_v2 = vmul.f32 %v770_v18, %v770_v18 }
 0x82e   :  { %v776_v19 = vsel %vm21_vm0, %v772_v2, 0.0 }
 0x82f   :  { %777 = vadd.xlane.f32.xlu1 %v776_v19  ;;  %v935_v19 = vld [vmem:[%s1418_s2 + $0x30] sm:$0xff] }
 0x888   :  { %v775_v23 = vpop.xlane.xlu0 %774 }
 0x889   :  { %v779_v24 = vmul.f32 %v775_v23, %v1174_v10  ;;  %v933_v23 = vld [vmem:[%s1418_s2 + $0x20] sm:$0xff] }
 0x88b   :  { %v781_v25 = vadd.f32 1e-05, %v779_v24 }
 0x88d   :  { %1086 = vrsqrt.f32 %v781_v25  ;;  %vm789_vm10 = vweird.f32 %v781_v25 }
 0x893   :  { %v1087_v26 = vpop.eup %1086 }
 0x894   :  { %v784_v27 = vmul.f32 %v1087_v26, %v781_v25  ;;  %vm790_vm9 = vweird.f32 %v1087_v26 }
 0x895   :  { %vm791_vm11 = vmor %vm789_vm10, %vm790_vm9 }
 0x896   :  { %v785_v28 = vmul.f32 %v1087_v26, %v784_v27 }
 0x898   :  { %v786_v29 = vmul.f32 0.5, %v785_v28 }
 0x89a   :  { %v787_v30 = vsub.f32 1.5, %v786_v29 }
 0x89c   :  { %v788_v31 = vmul.f32 %v1087_v26, %v787_v30 }
 0x89e   :  { %v792_v33 = vsel %vm791_vm11, %v1087_v26, %v788_v31 }
 0x89f   :  { %v803_v34 = vmul.f32 %v792_v33, %v769_v13 }
 0x8a1   :  { %v806_v37 = vmul.f32 %v805_v32, %v803_v34 }
 0x8a2   :  { %v778_v38 = vpop.xlane.xlu1 %777 }
 0x8a3   :  { %v780_v39 = vmul.f32 %v778_v38, %v1174_v10  ;;  %v809_v40 = vadd.f32 %v808_v35, %v806_v37  ;;  %v948_v10 = vld [vmem:[%s1418_s2 + $0x98] sm:$0xff] }
 0x8a4   :  { %950 = vmatpush.msrb.mxu2 %v948_v10 }
 0x8a5   :  { %v782_v41 = vadd.f32 1e-05, %v780_v39  ;;  %1029 = vmatmul.msk.f32.vlgmr.msra.gmra.mxu1 %vm21_vm0, %v809_v40 }
 0x8a6   :  { %951 = vmatpush.msrb.mxu2 %v947_v52 }
 0x8a7   :  { %1088 = vrsqrt.f32 %v782_v41  ;;  %vm799_vm13 = vweird.f32 %v782_v41 }
 0x8a8   :  { %952 = vmatpush.msrb.mxu2 %v946_v53 }
 0x8aa   :  { %953 = vmatpush.msrb.mxu2 %v945_v58 }
 0x8ac   :  { %954 = vmatpush.msrb.mxu2 %v944_v56 }
 0x8ad   :  { %v1089_v42 = vpop.eup %1088 }
 0x8ae   :  { %v794_v43 = vmul.f32 %v1089_v42, %v782_v41  ;;  %vm800_vm12 = vweird.f32 %v1089_v42  ;;  %955 = vmatpush.msrb.mxu2 %v943_v61 }
 0x8af   :  { %vm801_vm14 = vmor %vm799_vm13, %vm800_vm12 }
 0x8b0   :  { %v795_v44 = vmul.f32 %v1089_v42, %v794_v43  ;;  %956 = vmatpush.msrb.mxu2 %v942_v63 }
 0x8b2   :  { %v796_v45 = vmul.f32 0.5, %v795_v44  ;;  %957 = vmatpush.msrb.mxu2 %v941_v4 }
 0x8b4   :  { %v797_v46 = vsub.f32 1.5, %v796_v45  ;;  %958 = vmatpush.msrb.mxu2 %v940_v6 }
 0x8b6   :  { %v798_v47 = vmul.f32 %v1089_v42, %v797_v46  ;;  %959 = vmatpush.msrb.mxu2 %v939_v9 }
 0x8b8   :  { %v802_v48 = vsel %vm801_vm14, %v1089_v42, %v798_v47  ;;  %960 = vmatpush.msrb.mxu2 %v938_v12 }
 0x8b9   :  { %v804_v49 = vmul.f32 %v802_v48, %v770_v18  ;;  %v936_v18 = vld [vmem:[%s1418_s2 + $0x38] sm:$0xff]  ;;  %s1132_s2 = smov [#allocation2]  }
 0x8ba   :  { %961 = vmatpush.msrb.mxu2 %v937_v15  ;;  %s981_s28 = sshll.u32 %s1132_s2, 4  ;;  %s982_s28 = int_to_ptr.vmem [resolvable:$true] %s981_s28 }
 0x8bb   :  { %v807_v50 = vmul.f32 %v805_v32, %v804_v49 }
 0x8bc   :  { %962 = vmatpush.msrb.mxu2 %v936_v18 }
 0x8bd   :  { %v810_v51 = vadd.f32 %v808_v35, %v807_v50 }
 0x8be   :  { %963 = vmatpush.msrb.mxu2 %v935_v19 }
 0x8bf   :  { %1030 = vmatmul.msk.f32.gmra.mxu1 %vm21_vm0, %v810_v51 }
 0x8c0   :  { %964 = vmatpush.msrb.mxu2 %v934_v21 }
 0x8c2   :  { %965 = vmatpush.msrb.mxu2 %v933_v23 }
 0x922   :  { %v839_v59 = vpop.f32.mrf.mxu1 }
 0x923   :  { %v1362_v60 = vadd.f32 %v839_v59, %v815_v54 }
 0x925   :  { %v1368_v62 = vmul.f32 0.70710677, %v1362_v60 }
 0x927   :  { %v849_v1 = vmul.f32 %v1368_v62, %v1368_v62 }
 0x929   :  { %v850_v5 = vmin.f32 %v849_v1, 16.0 }
 0x92b   :  { %v851_v7 = vmul.f32 2.1237322e-06, %v850_v5  ;;  %v862_v8 = vmul.f32 3.8918573e-05, %v850_v5 }
 0x92d   :  { %v852_v57 = vadd.f32 0.00028619796, %v851_v7  ;;  %v863_v0 = vadd.f32 0.001143296, %v862_v8 }
 0x92f   :  { %v853_v13 = vmul.f32 %v852_v57, %v850_v5  ;;  %v864_v14 = vmul.f32 %v863_v0, %v850_v5 }
 0x931   :  { %v854_v16 = vadd.f32 0.0036580483, %v853_v13  ;;  %v865_v17 = vadd.f32 0.014752088, %v864_v14 }
 0x933   :  { %v866_v2 = vmul.f32 %v865_v17, %v850_v5  ;;  %v855_v55 = vmul.f32 %v854_v16, %v850_v5 }
 0x935   :  { %v867_v20 = vadd.f32 0.112945676, %v866_v2  ;;  %v856_v24 = vadd.f32 0.05243302, %v855_v55 }
 0x937   :  { %v868_v22 = vmul.f32 %v867_v20, %v850_v5  ;;  %v857_v28 = vmul.f32 %v856_v24, %v850_v5 }
 0x939   :  { %v869_v25 = vadd.f32 0.4994258, %v868_v22  ;;  %v858_v32 = vadd.f32 0.18741608, %v857_v28  ;;  %v949_v28 = vperm.slane %v1199_v36, 4 }
 0x93b   :  { %v870_v26 = vmul.f32 %v869_v25, %v850_v5  ;;  %v859_v37 = vmul.f32 %v858_v32, %v850_v5  ;;  %v845_v5 = vmul.f32 0.5, %v1362_v60 }
 0x93c   :  { %v842_v27 = vpop.f32.mrf.mxu1 }
 0x93d   :  { %v871_v29 = vadd.f32 1.0, %v870_v26  ;;  %v1402_v30 = vadd.f32 %v842_v27, %v815_v54  ;;  %v860_v44 = vadd.f32 1.1283791, %v859_v37 }
 0x93f   :  { %1090 = vrcp.f32 %v871_v29  ;;  %v848_v31 = vmul.f32 0.70710677, %v1402_v30  ;;  %v881_v45 = vand.u32 2147483647, %v871_v29  ;;  %v883_v46 = vand.u32 2147483648, %v871_v29 }
 0x940   :  { %vm877_vm1 = vweird.f32 %v871_v29  ;;  %v861_v53 = vmul.f32 %v860_v44, %v1368_v62  ;;  %v846_v25 = vmul.f32 0.5, %v1402_v30 }
 0x941   :  { %v889_v33 = vmul.f32 %v848_v31, %v848_v31  ;;  %v884_v10 = vor.u32 1.1754944e-38, %v883_v46  ;;  %vm882_vm3 = vcmp.eq.f32.partialorder %v881_v45, 8.507059e+37 }
 0x943   :  { %v890_v34 = vmin.f32 %v889_v33, 16.0 }
 0x945   :  { %v1091_v35 = vpop.eup %1090  ;;  %v891_v39 = vmul.f32 2.1237322e-06, %v890_v34  ;;  %v902_v40 = vmul.f32 3.8918573e-05, %v890_v34 }
 0x946   :  { %v873_v38 = vmul.f32 %v1091_v35, %v871_v29  ;;  %vm878_vm15 = vweird.f32 %v1091_v35 }
 0x947   :  { %v892_v42 = vadd.f32 0.00028619796, %v891_v39  ;;  %v903_v43 = vadd.f32 0.001143296, %v902_v40  ;;  %vm879_vm2 = vmor %vm877_vm1, %vm878_vm15 }
 0x948   :  { %v874_v41 = vsub.f32 1.0, %v873_v38 }
 0x949   :  { %v893_v48 = vmul.f32 %v892_v42, %v890_v34  ;;  %v904_v49 = vmul.f32 %v903_v43, %v890_v34 }
 0x94a   :  { %v875_v47 = vmul.f32 %v1091_v35, %v874_v41 }
 0x94b   :  { %v905_v51 = vadd.f32 0.014752088, %v904_v49  ;;  %v894_v52 = vadd.f32 0.0036580483, %v893_v48 }
 0x94c   :  { %v876_v50 = vadd.f32 %v1091_v35, %v875_v47 }
 0x94d   :  { %v906_v58 = vmul.f32 %v905_v51, %v890_v34  ;;  %v895_v63 = vmul.f32 %v894_v52, %v890_v34 }
 0x94e   :  { %v880_v54 = vsel %vm879_vm2, %v1091_v35, %v876_v50 }
 0x94f   :  { %v885_v56 = vsel %vm882_vm3, %v884_v10, %v880_v54  ;;  %v907_v61 = vadd.f32 0.112945676, %v906_v58  ;;  %v896_v8 = vadd.f32 0.05243302, %v895_v63 }
 0x950   :  { %v886_v59 = vmul.f32 %v885_v56, %v861_v53 }
 0x951   :  { %v908_v4 = vmul.f32 %v907_v61, %v890_v34  ;;  %v897_v12 = vmul.f32 %v896_v8, %v890_v34 }
 0x952   :  { %v1031_v1 = vclamps-f32 %v886_v59, 1.0 }
 0x953   :  { %v909_v7 = vadd.f32 0.4994258, %v908_v4  ;;  %v898_v62 = vadd.f32 0.18741608, %v897_v12 }
 0x954   :  { %v929_v6 = vadd.f32 1.0, %v1031_v1 }
 0x955   :  { %v910_v57 = vmul.f32 %v909_v7, %v890_v34  ;;  %v899_v14 = vmul.f32 %v898_v62, %v890_v34 }
 0x956   :  { %v931_v9 = vmul.f32 %v929_v6, %v845_v5 }
 0x957   :  { %v911_v0 = vadd.f32 1.0, %v910_v57  ;;  %v900_v18 = vadd.f32 1.1283791, %v899_v14 }
 0x958   :  { %966 = vmatmul.f32.vlgmr.msrb.gmra.mxu2 %v931_v9 }
 0x959   :  { %1092 = vrcp.f32 %v911_v0  ;;  %v923_v17 = vand.u32 2147483648, %v911_v0  ;;  %v921_v19 = vand.u32 2147483647, %v911_v0  ;;  %vm917_vm5 = vweird.f32 %v911_v0 }
 0x95a   :  { %v901_v20 = vmul.f32 %v900_v18, %v848_v31 }
 0x95b   :  { %v924_v55 = vor.u32 1.1754944e-38, %v923_v17  ;;  %vm922_vm7 = vcmp.eq.f32.partialorder %v921_v19, 8.507059e+37 }
 0x95f   :  { %v1093_v13 = vpop.eup %1092 }
 0x960   :  { %v913_v15 = vmul.f32 %v1093_v13, %v911_v0  ;;  %vm918_vm4 = vweird.f32 %v1093_v13 }
 0x961   :  { %vm919_vm6 = vmor %vm917_vm5, %vm918_vm4 }
 0x962   :  { %v914_v16 = vsub.f32 1.0, %v913_v15 }
 0x964   :  { %v915_v2 = vmul.f32 %v1093_v13, %v914_v16 }
 0x966   :  { %v916_v60 = vadd.f32 %v1093_v13, %v915_v2 }
 0x968   :  { %v920_v21 = vsel %vm919_vm6, %v1093_v13, %v916_v60 }
 0x969   :  { %v925_v22 = vsel %vm922_vm7, %v924_v55, %v920_v21 }
 0x96a   :  { %v926_v23 = vmul.f32 %v925_v22, %v901_v20 }
 0x96c   :  { %v1032_v24 = vclamps-f32 %v926_v23, 1.0 }
 0x96e   :  { %v930_v26 = vadd.f32 1.0, %v1032_v24 }
 0x970   :  { %v932_v27 = vmul.f32 %v930_v26, %v846_v25 }
 0x972   :  { %969 = vmatmul.f32.gmra.mxu2 %v932_v27 }
 0x9db   :  { %v967_v29 = vpop.f32.mrf.mxu2 }
 0x9dc   :  { %v968_v32 = vadd.f32 %v967_v29, %v949_v28 }
 0x9de   :  { %v973_v33 = vadd.f32 %v968_v32, %v1311_v3 }
 0x9e0   :  { %975 = vst.msk [vmem:[#allocation2] sm:$0xff] %vm21_vm0, %v973_v33 }
 0x9f5   :  { %v970_v31 = vpop.f32.mrf.mxu2 }
 0x9f6   :  { %v971_v34 = vadd.f32 %v970_v31, %v949_v28 }
 0x9f8   :  { %v974_v30 = vadd.f32 %v971_v34, %v1318_v11 }
 0x9fa   :  { %976 = vst.msk [vmem:[#allocation2 + $0x8] sm:$0xff] %vm21_vm0, %v974_v30 }
 0x9fb   :  { %989 = dma.vmem_to_hbm [thread:$0]  %s982_s28, 256, %s984_s5, [#allocation3], %s1133_s6, %s1133_s6, %s1134_s7  }
 0x9fc   :  { %1118 = dma.done.wait [#allocation3], 256  }
 0x9fd   :  { %1119 = vsyncadd [#allocation3], 4294967040 }
 0x9fe   :  { %994 = vsyncpa [#allocation3], 1 }

</bundles_post_ra>
